<compile_context>
chip_gen: v6e
topology: v6e:2x2x1
jax: 0.10.0
libtpu: 0.0.40
codegen_flags: <defaults>
</compile_context>

<pallas_src>
import functools

import jax
import jax.numpy as jnp
from jax.experimental import pallas as pl
from jax.experimental.pallas import tpu as pltpu

_LANE = 128                      # lane width (last dim of the 2-D slab)
_SUB = 1024                      # sub-chunk rows per inner step: (1024,128) f32 = 512 KiB
_TARGET_BLOCK_BYTES = 4 << 20    # ~4 MiB of input per operand per grid step
_VMEM_LIMIT_BYTES = 32 << 20     # 2 inputs x 2 buffers x 4 MiB = 16 MiB + headroom


def _round_up(v, m):
    return ((v + m - 1) // m) * m


def _num_tensorcores() -> int:
    """Split the streaming sweep across TensorCores only where it pays (2 TCs on v7x)."""
    try:
        kind = jax.devices()[0].device_kind.lower()
    except Exception:
        return 1
    return 2 if "v7" in kind else 1


def _l1l2_kernel(x_ref, y_ref, out_ref, acc_ref, *,
                 rows, tm, sub, bpc, lam, needs_mask):
    """Accumulate lam*|x-y| + (1-lam)*(x-y)^2 into a resident (8, 128) f32 accumulator.

    acc_ref is a VMEM scratch vreg persisting across the inner ("arbitrary") grid axis;
    the single full reduce to a per-split scalar runs once, on the last inner step.
    """
    c = pl.program_id(0)          # split / core index ("parallel")
    i = pl.program_id(1)          # block index within the split ("arbitrary")
    nsub = tm // sub

    @pl.when(i == 0)
    def _init():
        acc_ref[...] = jnp.zeros_like(acc_ref)

    def accumulate(rows_remaining=None):
        # Static Python loop: sub-chunk intermediates stay small while the DMA'd block
        # stays large; accumulation is pure vreg-vreg VPU work (no XLU in the hot loop).
        for j in range(nsub):
            xs = x_ref[pl.ds(j * sub, sub), :].astype(jnp.float32)
            ys = y_ref[pl.ds(j * sub, sub), :].astype(jnp.float32)
            d = xs - ys
            if rows_remaining is not None:
                # Select (NOT multiply) so stale NaN/Inf in OOB rows of an edge block
                # can never leak into the sums.
                row = jax.lax.broadcasted_iota(jnp.int32, d.shape, 0) + j * sub
                d = jnp.where(row < rows_remaining, d, 0.0)
            contrib = lam * jnp.abs(d) + (1.0 - lam) * (d * d)
            acc_ref[...] += jnp.sum(contrib.reshape(sub // 8, 8, _LANE), axis=0)

    if needs_mask:
        start = (c * bpc + i) * tm
        is_edge = start + tm > rows       # last real block and/or overflow duplicates

        @pl.when(jnp.logical_not(is_edge))
        def _interior():
            accumulate()

        @pl.when(is_edge)
        def _edge():
            accumulate(rows_remaining=rows - start)
    else:
        accumulate()

    @pl.when(i == bpc - 1)
    def _finalize():
        # One-time cross-lane/sublane reduce; wrapper only adds nsplit scalars.
        out_ref[...] = jnp.sum(acc_ref[...], keepdims=True)


@functools.partial(jax.jit, static_argnames=("lam",))
def l1l2_loss(x, y, lam: float = 0.9):
    """Pallas equivalent of L1L2Loss(lam).forward(x, y) with module defaults
    (reduction='mean', weights=None). Returns a float32 scalar."""
    assert x.shape == y.shape, "x and y must have the same shape"
    n = x.size
    lam = float(lam)

    xf = jnp.ravel(x)
    yf = jnp.ravel(y)

    rows = n // _LANE
    n_main = rows * _LANE
    tail = n - n_main

    # <128 leftover elements (and tiny inputs) handled with plain JAX — avoids the old
    # jnp.pad fallback that materialized full padded copies of both inputs in HBM.
    # TODO(synk): a pl.ANY manual-DMA path could also avoid the prefix-slice copy when
    # tail != 0; not worth it for the module defaults.
    tail_sum = jnp.float32(0.0)
    if tail:
        dt = xf[n_main:].astype(jnp.float32) - yf[n_main:].astype(jnp.float32)
        tail_sum = lam * jnp.sum(jnp.abs(dt)) + (1.0 - lam) * jnp.sum(dt * dt)

    if rows == 0:
        return tail_sum / n

    x2 = (xf[:n_main] if tail else xf).reshape(rows, _LANE)
    y2 = (yf[:n_main] if tail else yf).reshape(rows, _LANE)

    # Block rows sized by bytes (~4 MiB per operand per step), kept a multiple of the
    # sub-chunk (and of 8) so the in-kernel fold is layout-free.
    itemsize = jnp.dtype(x.dtype).itemsize
    target_rows = max(_SUB, _TARGET_BLOCK_BYTES // (_LANE * itemsize))
    if rows >= _SUB:
        tm = max(_SUB, (min(target_rows, rows) // _SUB) * _SUB)
        sub = _SUB
    else:
        tm = _round_up(rows, 8)
        sub = tm

    blocks_total = pl.cdiv(rows, tm)
    nsplit = min(_num_tensorcores(), blocks_total)
    bpc = pl.cdiv(blocks_total, nsplit)              # blocks per split
    needs_mask = (rows % tm != 0) or (nsplit * bpc != blocks_total)

    last_block = blocks_total - 1
    if nsplit * bpc > blocks_total:
        # Clamp so the index_map never points past the last block; the edge mask zeroes
        # the duplicated contribution of the overflow steps.
        def in_map(c, i):
            return (jnp.minimum(c * bpc + i, last_block), 0)
    else:
        def in_map(c, i):
            return (c * bpc + i, 0)

    kernel = functools.partial(
        _l1l2_kernel, rows=rows, tm=tm, sub=sub, bpc=bpc, lam=lam,
        needs_mask=needs_mask)

    partials = pl.pallas_call(
        kernel,
        out_shape=jax.ShapeDtypeStruct((nsplit, 1, 1), jnp.float32),
        grid_spec=pltpu.PrefetchScalarGridSpec(
            num_scalar_prefetch=0,
            grid=(nsplit, bpc),
            in_specs=[
                pl.BlockSpec((tm, _LANE), in_map),
                pl.BlockSpec((tm, _LANE), in_map),
            ],
            out_specs=pl.BlockSpec((None, 1, 1), lambda c, i: (c, 0, 0)),
            scratch_shapes=[pltpu.VMEM((8, _LANE), jnp.float32)],
        ),
        compiler_params=pltpu.CompilerParams(
            dimension_semantics=("parallel", "arbitrary"),
            vmem_limit_bytes=_VMEM_LIMIT_BYTES,
        ),
        cost_estimate=pl.CostEstimate(
            flops=7 * n_main, transcendentals=0,
            bytes_accessed=2 * n_main * itemsize + nsplit * 4),
    )(x2, y2)

    # TODO(synk): per-channel `weights` only matters with reduction='none' (non-scalar
    # loss); module defaults use weights=None, so the scalar path is implemented here.
    return (jnp.sum(partials) + tail_sum) / n


if __name__ == "__main__":
    # Small 5-D inputs consistent with the module's ndims=5 default (N, C, D, H, W).
    key = jax.random.PRNGKey(0)
    kx, ky = jax.random.split(key)
    shape = (2, 4, 4, 8, 16)  # 4096 elements
    x = jax.random.normal(kx, shape, dtype=jnp.float32)
    y = jax.random.normal(ky, shape, dtype=jnp.float32)

    loss = jax.block_until_ready(l1l2_loss(x, y, lam=0.9))

    # Pure-JAX reference (matches the PyTorch semantics with default 'mean' reduction).
    lam = 0.9
    ref = lam * jnp.mean(jnp.abs(x - y)) + (1.0 - lam) * jnp.mean((x - y) ** 2)

    assert jnp.allclose(loss, ref, rtol=1e-5, atol=1e-6), (loss, ref)
    print("KERNEL_OK")
</pallas_src>

<mosaic_0001>
module attributes {stable_mosaic.version = 11 : i64} {
  func.func @_l1l2_kernel(%arg0: i32, %arg1: i32, %arg2: memref<32x128xf32, #tpu.memory_space<vmem>>, %arg3: memref<32x128xf32, #tpu.memory_space<vmem>>, %arg4: memref<1x1x1xf32, #tpu.memory_space<vmem>>, %arg5: memref<8x128xf32, #tpu.memory_space<vmem>>) attributes {dimension_semantics = [#tpu.dimension_semantics<parallel>, #tpu.dimension_semantics<arbitrary>], iteration_bounds = array<i64: 1, 1>, scalar_prefetch = 0 : i64, scratch_operands = 1 : i64, tpu.core_type = #tpu.core_type<tc>, window_params = [{transform_indices = @transform_0, window_bounds = array<i64: 32, 128>}, {transform_indices = @transform_1, window_bounds = array<i64: 32, 128>}, {transform_indices = @transform_2, window_bounds = array<i64: 1, 1, 1>}]} {
    %c0_i32 = arith.constant 0 : i32
    %0 = arith.cmpi eq, %arg1, %c0_i32 : i32
    %1 = arith.extui %0 : i1 to i32
    %c0_i32_0 = arith.constant 0 : i32
    %2 = arith.cmpi ne, %1, %c0_i32_0 : i32
    scf.if %2 {
      %cst_12 = arith.constant 0.000000e+00 : f32
      %21 = vector.broadcast %cst_12 : f32 to vector<8x128xf32>
      %c0_13 = arith.constant 0 : index
      %c0_14 = arith.constant 0 : index
      %22 = vector.load %arg5[%c0_13, %c0_14] : memref<8x128xf32, #tpu.memory_space<vmem>>, vector<8x128xf32>
      tpu.vector_store %arg5[%c0_13, %c0_14], %21 {strides = array<i32>} : memref<8x128xf32, #tpu.memory_space<vmem>>, vector<8x128xf32>,
    } else {
    }
    %c0 = arith.constant 0 : index
    %c0_1 = arith.constant 0 : index
    %3 = vector.load %arg2[%c0, %c0_1] : memref<32x128xf32, #tpu.memory_space<vmem>>, vector<32x128xf32>
    %c0_2 = arith.constant 0 : index
    %c0_3 = arith.constant 0 : index
    %4 = vector.load %arg3[%c0_2, %c0_3] : memref<32x128xf32, #tpu.memory_space<vmem>>, vector<32x128xf32>
    %5 = arith.subf %3, %4 : vector<32x128xf32>
    %6 = math.absf %5 : vector<32x128xf32>
    %cst = arith.constant 0.899999976 : f32
    %7 = vector.broadcast %cst : f32 to vector<32x128xf32>
    %8 = arith.mulf %7, %6 : vector<32x128xf32>
    %9 = arith.mulf %5, %5 : vector<32x128xf32>
    %cst_4 = arith.constant 1.000000e-01 : f32
    %10 = vector.broadcast %cst_4 : f32 to vector<32x128xf32>
    %11 = arith.mulf %10, %9 : vector<32x128xf32>
    %12 = arith.addf %8, %11 : vector<32x128xf32>
    %c0_5 = arith.constant 0 : index
    %c0_6 = arith.constant 0 : index
    %13 = vector.load %arg5[%c0_5, %c0_6] : memref<8x128xf32, #tpu.memory_space<vmem>>, vector<8x128xf32>
    %14 = vector.shape_cast %12 : vector<32x128xf32> to vector<4x8x128xf32>
    %cst_7 = arith.constant dense<0.000000e+00> : vector<8x128xf32>
    %15 = vector.multi_reduction <add>, %14, %cst_7 [0] : vector<4x8x128xf32> to vector<8x128xf32>
    %16 = arith.addf %13, %15 : vector<8x128xf32>
    %c0_8 = arith.constant 0 : index
    %c0_9 = arith.constant 0 : index
    %17 = vector.load %arg5[%c0_8, %c0_9] : memref<8x128xf32, #tpu.memory_space<vmem>>, vector<8x128xf32>
    tpu.vector_store %arg5[%c0_8, %c0_9], %16 {strides = array<i32>} : memref<8x128xf32, #tpu.memory_space<vmem>>, vector<8x128xf32>,
    %c0_i32_10 = arith.constant 0 : i32
    %18 = arith.cmpi eq, %arg1, %c0_i32_10 : i32
    %19 = arith.extui %18 : i1 to i32
    %c0_i32_11 = arith.constant 0 : i32
    %20 = arith.cmpi ne, %19, %c0_i32_11 : i32
    scf.if %20 {
      %c0_12 = arith.constant 0 : index
      %c0_13 = arith.constant 0 : index
      %21 = vector.load %arg5[%c0_12, %c0_13] : memref<8x128xf32, #tpu.memory_space<vmem>>, vector<8x128xf32>
      %22 = vector.shape_cast %21 : vector<8x128xf32> to vector<1x8x128xf32>
      %cst_14 = arith.constant dense<0.000000e+00> : vector<1xf32>
      %23 = vector.multi_reduction <add>, %22, %cst_14 [1, 2] : vector<1x8x128xf32> to vector<1xf32>
      %24 = vector.shape_cast %23 : vector<1xf32> to vector<1x1x1xf32>
      %25 = vector.extract %24[0, 0, 0] : f32 from vector<1x1x1xf32>
      %26 = vector.broadcast %25 : f32 to vector<1x1xf32>
      %c0_15 = arith.constant 0 : index
      %c0_16 = arith.constant 0 : index
      %c0_17 = arith.constant 0 : index
      %27 = vector.load %arg4[%c0_15, %c0_16, %c0_17] : memref<1x1x1xf32, #tpu.memory_space<vmem>>, vector<1x1x1xf32>
      %28 = vector.shape_cast %27 : vector<1x1x1xf32> to vector<1x1xf32>
      %29 = vector.shape_cast %26 : vector<1x1xf32> to vector<1x1x1xf32>
      tpu.vector_store %arg4[%c0_15, %c0_16, %c0_17], %29 {strides = array<i32>} : memref<1x1x1xf32, #tpu.memory_space<vmem>>, vector<1x1x1xf32>,
    } else {
    }
    return
  }
  func.func @transform_0(%arg0: i32, %arg1: i32) -> (i32, i32) {
    %c1_i32 = arith.constant 1 : i32
    %0 = arith.muli %arg0, %c1_i32 : i32
    %1 = arith.addi %0, %arg1 : i32
    %c0_i32 = arith.constant 0 : i32
    %c0_i32_0 = arith.constant 0 : i32
    return %1, %c0_i32 : i32, i32
  }
  func.func @transform_1(%arg0: i32, %arg1: i32) -> (i32, i32) {
    %c1_i32 = arith.constant 1 : i32
    %0 = arith.muli %arg0, %c1_i32 : i32
    %1 = arith.addi %0, %arg1 : i32
    %c0_i32 = arith.constant 0 : i32
    %c0_i32_0 = arith.constant 0 : i32
    return %1, %c0_i32 : i32, i32
  }
  func.func @transform_2(%arg0: i32, %arg1: i32) -> (i32, i32, i32) {
    %c0_i32 = arith.constant 0 : i32
    %c0_i32_0 = arith.constant 0 : i32
    %c0_i32_1 = arith.constant 0 : i32
    return %arg0, %c0_i32, %c0_i32_0 : i32, i32, i32
  }
}

</mosaic_0001>

<bundles_post_ra>
// kernel: l1l2_loss.1
= control target key start
LH: loop header
LB: loop body
LE: loop exit
PB: predicated region body
PF: predicated region fallthrough
CT: control target
= control target key end

     0   :  { %s209_s0 = inlined_call_operand.vmem [shape: f32[32,128], index: 0, kind: input, shape index: {}]   ;;  %s210_s1 = inlined_call_operand.vmem [shape: f32[32,128], index: 1, kind: input, shape index: {}]   ;;  %s211_s2 = inlined_call_operand.hbm [shape: f32[1,1,1], index: 2, kind: output, shape index: {}]  }
   0x1   :  { %v61_v0 = vld [vmem:[%s209_s0] sm:$0xff]  ;;  %v62_v1 = vld [vmem:[%s209_s0 + $0x8] sm:$0xff]  ;;  %v63_v2 = vld [vmem:[%s209_s0 + $0x10] sm:$0xff] }
   0x2   :  { %v64_v3 = vld [vmem:[%s209_s0 + $0x18] sm:$0xff]  ;;  %v65_v4 = vld [vmem:[%s210_s1] sm:$0xff]  ;;  %v66_v5 = vld [vmem:[%s210_s1 + $0x8] sm:$0xff] }
   0x3   :  { %v67_v6 = vld [vmem:[%s210_s1 + $0x10] sm:$0xff]  ;;  %v68_v7 = vld [vmem:[%s210_s1 + $0x18] sm:$0xff]  ;;  %v69_v8 = vsub.f32 %v61_v0, %v65_v4  ;;  %v70_v9 = vsub.f32 %v62_v1, %v66_v5 }
   0x4   :  { %7 = vsyncpa [#allocation4], 0  ;;  %v71_v10 = vsub.f32 %v63_v2, %v67_v6  ;;  %v72_v11 = vsub.f32 %v64_v3, %v68_v7  ;;  %s166_s0 = smov [#allocation3]   ;;  %vm113_vm0 = vcmask 0  }
   0x5   :  { %v73_v12 = vand.u32 2147483647, %v69_v8  ;;  %v74_v13 = vand.u32 2147483647, %v70_v9  ;;  %v81_v14 = vmul.f32 %v69_v8, %v69_v8  ;;  %v82_v15 = vmul.f32 %v70_v9, %v70_v9  ;;  %s121_s1 = sshll.u32 %s166_s0, 4  ;;  %s122_s1 = int_to_ptr.vmem [resolvable:$true] %s121_s1 }
   0x6   :  { %v75_v16 = vand.u32 2147483647, %v71_v10  ;;  %v76_v17 = vand.u32 2147483647, %v72_v11  ;;  %v83_v18 = vmul.f32 %v71_v10, %v71_v10  ;;  %v84_v19 = vmul.f32 %v72_v11, %v72_v11  ;;  %s144_s26 = scalar_lea.vmem %s122_s1, 16  ;;  %s148_s27 = scalar_lea.vmem %s122_s1, 32 }
   0x7   :  { %v77_v20 = vmul.f32 0.9, %v73_v12  ;;  %v78_v21 = vmul.f32 0.9, %v74_v13  ;;  %v85_v22 = vmul.f32 0.1, %v81_v14  ;;  %p145_p0 = scmp.ne.s32.totalorder %s122_s1, %s144_s26  ;;  %p149_p1 = scmp.lt.s32.totalorder %s122_s1, %s122_s1 }
   0x8   :  { %v79_v23 = vmul.f32 0.9, %v75_v16  ;;  %v80_v24 = vmul.f32 0.9, %v76_v17  ;;  %v86_v25 = vmul.f32 0.1, %v82_v15  ;;  %p150_p2 = scmp.lt.s32.totalorder %s148_s27, %s144_s26 }
   0x9   :  { %v87_v26 = vmul.f32 0.1, %v83_v18  ;;  %v88_v27 = vmul.f32 0.1, %v84_v19  ;;  %v89_v28 = vadd.f32 %v85_v22, %v77_v20 }
   0xa   :  { %v90_v29 = vadd.f32 %v86_v25, %v78_v21  ;;  %p151_p3 = por %p150_p2, %p149_p1 }
   0xb   :  { %v91_v30 = vadd.f32 %v87_v26, %v79_v23  ;;  %v92_v31 = vadd.f32 %v88_v27, %v80_v24 }
   0xc   :  { %v94_v32 = vadd.f32 %v90_v29, %v89_v28  ;;  %p152_p4 = pnand %p151_p3, %p145_p0 }
   0xe   :  { %v95_v33 = vadd.f32 %v94_v32, %v91_v30 }
  0x10   :  { %v96_v34 = vadd.f32 %v95_v33, %v92_v31 }
  0x12   :  { %103 = vadd.xlane.f32.xlu0 %v96_v34 }
  0x9b   :  { %v104_v35 = vpop.xlane.xlu0 %103 }
  0x9c   :  { %v105_v36 = vrot.slane %v104_v35, 4 }
  0x9e   :  { %v106_v37 = vadd.f32 %v105_v36, %v104_v35 }
  0xa0   :  { %v107_v38 = vrot.slane %v106_v37, 2 }
  0xa2   :  { %v108_v39 = vadd.f32 %v107_v38, %v106_v37 }
  0xa4   :  { %v109_v40 = vrot.slane %v108_v39, 1 }
  0xa6   :  { %v110_v41 = vadd.f32 %v109_v40, %v108_v39 }
  0xa8   :  { %141 = vpush %v110_v41 }
  0xd9   :  { %s142_s25 = spop %141 }
  0xda   :  { %v112_v42 = vstv %s142_s25 }
  0xdb   :  { %114 = vst.msk [vmem:[#allocation3] sm:$0x1] %vm113_vm0, %v112_v42 }
  0xdc   :  { %155 = shalt.err (!%p152_p4)
}
  0xdd   :  { %124 = dma.vmem_to_hbm [thread:$0]  %s122_s1, 16, %s211_s2, [#allocation4]  }
  0xde   :  { %164 = dma.done.wait [#allocation4], 16  }
  0xdf   :  { %165 = vsyncadd [#allocation4], 4294967280 }
  0xe0   :  { %128 = vsyncpa [#allocation4], 1 }

</bundles_post_ra>
